<compile_context>
chip_gen: v7x
topology: tpu7x:2x2x1
jax: 0.10.0
libtpu: 0.0.40
codegen_flags: <defaults>
</compile_context>

<pallas_src>
import jax
import jax.numpy as jnp
from jax.experimental import pallas as pl
from jax.experimental.pallas import tpu as pltpu


def _fuse_kernel(u_ref, p_ref, wu_ref, wp_ref, b_ref, o_ref):
    # u_ref : (bt, U)    user-embedding rows
    # p_ref : (bt, P)    poi-embedding rows
    # wu_ref: (U, O)     weight.T[:U]   (K, N orientation)
    # wp_ref: (P, O)     weight.T[U:]
    # b_ref : (1, O)     bias
    # o_ref : (bt, O)    output block
    acc = jnp.dot(u_ref[...], wu_ref[...], preferred_element_type=jnp.float32)
    acc = acc + jnp.dot(p_ref[...], wp_ref[...], preferred_element_type=jnp.float32)
    y = acc + b_ref[...].astype(jnp.float32)
    # LeakyReLU(negative_slope=0.2)
    y = jnp.where(y >= 0.0, y, 0.2 * y)
    o_ref[...] = y.astype(o_ref.dtype)


def _round_up(x, m):
    return ((x + m - 1) // m) * m


def fuse_embeddings1(user_embed, poi_embed, weight, bias, *,
                     block_b=2048, min_pallas_batch=64):
    """Pallas implementation of FuseEmbeddings1.forward.

    user_embed: (U,) or (B, U)
    poi_embed : (P,) or (B, P)
    weight    : (O, U+P)   (PyTorch nn.Linear layout: out x in)
    bias      : (O,)
    returns   : (O,) or (B, O), matching the input rank.
    """
    assert block_b % 8 == 0, "block_b must be a multiple of 8 (sublane constraint)"

    squeeze = user_embed.ndim == 1
    u = user_embed.reshape(1, -1) if squeeze else user_embed
    p = poi_embed.reshape(1, -1) if squeeze else poi_embed

    B, U = u.shape
    P = p.shape[1]
    O, In = weight.shape
    assert In == U + P, f"weight in-dim {In} != U+P {U + P}"
    assert p.shape[0] == B, "user/poi batch mismatch"

    out_dtype = jnp.result_type(u.dtype, p.dtype, weight.dtype)

    # Tiny problems: the pallas_call launch + DMA round trips are pure
    # overhead; XLA's fused matvec/elementwise path wins.
    if squeeze or B < min_pallas_batch:
        x = jnp.concatenate([u, p], axis=-1).astype(out_dtype)
        y = x @ weight.T.astype(out_dtype) + bias.astype(out_dtype)
        y = jnp.where(y >= 0, y, jnp.asarray(0.2, y.dtype) * y)
        return y.reshape(O) if squeeze else y

    u = u.astype(out_dtype)
    p = p.astype(out_dtype)
    # One-time (tiny) weight transpose / split into (K, N) halves.
    wt = weight.astype(out_dtype).T           # (U+P, O)
    wu = wt[:U]                               # (U, O)
    wp = wt[U:]                               # (P, O)
    b2 = bias.reshape(1, O).astype(out_dtype)

    # Batch tiling: large sublane-aligned tiles (amortize per-step overhead),
    # but capped so the grid has >= 2 blocks (v7x megacore sharding).
    bt = min(block_b, _round_up(pl.cdiv(B, 2), 8))
    bt = max(bt, 8)
    n_blocks = pl.cdiv(B, bt)   # last block may be partial; Pallas handles OOB

    out = pl.pallas_call(
        _fuse_kernel,
        out_shape=jax.ShapeDtypeStruct((B, O), out_dtype),
        grid_spec=pltpu.PrefetchScalarGridSpec(
            num_scalar_prefetch=0,
            grid=(n_blocks,),
            in_specs=[
                pl.BlockSpec((bt, U), lambda i: (i, 0)),
                pl.BlockSpec((bt, P), lambda i: (i, 0)),
                pl.BlockSpec((U, O), lambda i: (0, 0)),
                pl.BlockSpec((P, O), lambda i: (0, 0)),
                pl.BlockSpec((1, O), lambda i: (0, 0)),
            ],
            out_specs=pl.BlockSpec((bt, O), lambda i: (i, 0)),
        ),
        compiler_params=pltpu.CompilerParams(
            dimension_semantics=("parallel",),
        ),
    )(u, p, wu, wp, b2)

    return out


def _reference(user_embed, poi_embed, weight, bias):
    x = jnp.concatenate([user_embed, poi_embed], axis=-1)
    y = x @ weight.T + bias
    return jnp.where(y >= 0.0, y, 0.2 * y)


if __name__ == "__main__":
    user_embed_dim = 32
    poi_embed_dim = 32
    embed_dim = user_embed_dim + poi_embed_dim

    key = jax.random.PRNGKey(0)
    k_u, k_p, k_w, k_b, k_ub, k_pb = jax.random.split(key, 6)

    # nn.Linear-shaped parameters: weight (out, in), bias (out,).
    bound = 1.0 / (embed_dim ** 0.5)
    weight = jax.random.uniform(
        k_w, (user_embed_dim, embed_dim), jnp.float32, -bound, bound)
    bias = jax.random.uniform(
        k_b, (user_embed_dim,), jnp.float32, -bound, bound)

    # --- Case 1: exact module semantics (single 1-D user / poi vectors). ---
    # Tiny problem -> takes the fused XLA fast path by design.
    user_embed = jax.random.normal(k_u, (user_embed_dim,), jnp.float32)
    poi_embed = jax.random.normal(k_p, (poi_embed_dim,), jnp.float32)

    out = jax.block_until_ready(
        fuse_embeddings1(user_embed, poi_embed, weight, bias))
    ref = _reference(user_embed, poi_embed, weight, bias)
    assert out.shape == (user_embed_dim,)
    assert jnp.allclose(out, ref, atol=1e-5, rtol=1e-5), "1-D case mismatch"

    # --- Case 2: batched Pallas path (2 grid blocks, partial last block). ---
    B = 200  # not a multiple of the tile -> exercises Pallas boundary handling
    user_batch = jax.random.normal(k_ub, (B, user_embed_dim), jnp.float32)
    poi_batch = jax.random.normal(k_pb, (B, poi_embed_dim), jnp.float32)

    out_b = jax.block_until_ready(
        fuse_embeddings1(user_batch, poi_batch, weight, bias))
    ref_b = _reference(user_batch, poi_batch, weight, bias)
    assert out_b.shape == (B, user_embed_dim)
    assert jnp.allclose(out_b, ref_b, atol=1e-5, rtol=1e-5), "batched mismatch"

    print("KERNEL_OK")
</pallas_src>

<mosaic_0001>
module attributes {stable_mosaic.version = 11 : i64} {
  func.func @_fuse_kernel(%arg0: i32, %arg1: memref<104x32xf32, #tpu.memory_space<vmem>>, %arg2: memref<104x32xf32, #tpu.memory_space<vmem>>, %arg3: memref<32x32xf32, #tpu.memory_space<vmem>>, %arg4: memref<32x32xf32, #tpu.memory_space<vmem>>, %arg5: memref<1x32xf32, #tpu.memory_space<vmem>>, %arg6: memref<104x32xf32, #tpu.memory_space<vmem>>) attributes {dimension_semantics = [#tpu.dimension_semantics<parallel>], iteration_bounds = array<i64: 2>, scalar_prefetch = 0 : i64, scratch_operands = 0 : i64, tpu.core_type = #tpu.core_type<tc>, window_params = [{transform_indices = @transform_0, window_bounds = array<i64: 104, 32>}, {transform_indices = @transform_1, window_bounds = array<i64: 104, 32>}, {pipeline_mode = #tpu.pipeline_mode<synchronous>, transform_indices = @transform_2, window_bounds = array<i64: 32, 32>}, {pipeline_mode = #tpu.pipeline_mode<synchronous>, transform_indices = @transform_3, window_bounds = array<i64: 32, 32>}, {pipeline_mode = #tpu.pipeline_mode<synchronous>, transform_indices = @transform_4, window_bounds = array<i64: 1, 32>}, {transform_indices = @transform_5, window_bounds = array<i64: 104, 32>}]} {
    %c0 = arith.constant 0 : index
    %c0_0 = arith.constant 0 : index
    %0 = vector.load %arg1[%c0, %c0_0] : memref<104x32xf32, #tpu.memory_space<vmem>>, vector<104x32xf32>
    %c0_1 = arith.constant 0 : index
    %c0_2 = arith.constant 0 : index
    %1 = vector.load %arg3[%c0_1, %c0_2] : memref<32x32xf32, #tpu.memory_space<vmem>>, vector<32x32xf32>
    %cst = arith.constant dense<0.000000e+00> : vector<104x32xf32>
    %2 = tpu.matmul %0, %1, %cst {dimension_numbers = #tpu.dot_dimension_numbers<[1], [0], [0], [1], [0, 0, 1, 1], [], []>} : vector<104x32xf32>, vector<32x32xf32>, vector<104x32xf32> -> vector<104x32xf32>
    %c0_3 = arith.constant 0 : index
    %c0_4 = arith.constant 0 : index
    %3 = vector.load %arg2[%c0_3, %c0_4] : memref<104x32xf32, #tpu.memory_space<vmem>>, vector<104x32xf32>
    %c0_5 = arith.constant 0 : index
    %c0_6 = arith.constant 0 : index
    %4 = vector.load %arg4[%c0_5, %c0_6] : memref<32x32xf32, #tpu.memory_space<vmem>>, vector<32x32xf32>
    %cst_7 = arith.constant dense<0.000000e+00> : vector<104x32xf32>
    %5 = tpu.matmul %3, %4, %cst_7 {dimension_numbers = #tpu.dot_dimension_numbers<[1], [0], [0], [1], [0, 0, 1, 1], [], []>} : vector<104x32xf32>, vector<32x32xf32>, vector<104x32xf32> -> vector<104x32xf32>
    %6 = arith.addf %2, %5 : vector<104x32xf32>
    %c0_8 = arith.constant 0 : index
    %c0_9 = arith.constant 0 : index
    %7 = vector.load %arg5[%c0_8, %c0_9] : memref<1x32xf32, #tpu.memory_space<vmem>>, vector<1x32xf32>
    %8 = vector.broadcast %7 : vector<1x32xf32> to vector<104x32xf32>
    %9 = arith.addf %6, %8 : vector<104x32xf32>
    %cst_10 = arith.constant 0.000000e+00 : f32
    %10 = vector.broadcast %cst_10 : f32 to vector<104x32xf32>
    %11 = arith.cmpf oge, %9, %10 : vector<104x32xf32>
    %cst_11 = arith.constant 2.000000e-01 : f32
    %12 = vector.broadcast %cst_11 : f32 to vector<104x32xf32>
    %13 = arith.mulf %12, %9 : vector<104x32xf32>
    %14 = arith.select %11, %9, %13 : vector<104x32xi1>, vector<104x32xf32>
    %c0_12 = arith.constant 0 : index
    %c0_13 = arith.constant 0 : index
    %15 = vector.load %arg6[%c0_12, %c0_13] : memref<104x32xf32, #tpu.memory_space<vmem>>, vector<104x32xf32>
    tpu.vector_store %arg6[%c0_12, %c0_13], %14 {strides = array<i32>} : memref<104x32xf32, #tpu.memory_space<vmem>>, vector<104x32xf32>,
    return
  }
  func.func @transform_0(%arg0: i32) -> (i32, i32) {
    %c0_i32 = arith.constant 0 : i32
    %c0_i32_0 = arith.constant 0 : i32
    return %arg0, %c0_i32 : i32, i32
  }
  func.func @transform_1(%arg0: i32) -> (i32, i32) {
    %c0_i32 = arith.constant 0 : i32
    %c0_i32_0 = arith.constant 0 : i32
    return %arg0, %c0_i32 : i32, i32
  }
  func.func @transform_2(%arg0: i32) -> (i32, i32) {
    %c0_i32 = arith.constant 0 : i32
    %c0_i32_0 = arith.constant 0 : i32
    %c0_i32_1 = arith.constant 0 : i32
    return %c0_i32, %c0_i32_0 : i32, i32
  }
  func.func @transform_3(%arg0: i32) -> (i32, i32) {
    %c0_i32 = arith.constant 0 : i32
    %c0_i32_0 = arith.constant 0 : i32
    %c0_i32_1 = arith.constant 0 : i32
    return %c0_i32, %c0_i32_0 : i32, i32
  }
  func.func @transform_4(%arg0: i32) -> (i32, i32) {
    %c0_i32 = arith.constant 0 : i32
    %c0_i32_0 = arith.constant 0 : i32
    %c0_i32_1 = arith.constant 0 : i32
    return %c0_i32, %c0_i32_0 : i32, i32
  }
  func.func @transform_5(%arg0: i32) -> (i32, i32) {
    %c0_i32 = arith.constant 0 : i32
    %c0_i32_0 = arith.constant 0 : i32
    return %arg0, %c0_i32 : i32, i32
  }
}

</mosaic_0001>

<bundles_post_ra>
// kernel: tpu_custom_call.1
= control target key start
LH: loop header
LB: loop body
LE: loop exit
PB: predicated region body
PF: predicated region fallthrough
CT: control target
= control target key end

     0   :  { %s1414_s18 = smov 0   ;;  %s1416_s19 = smov 0   ;;  %s1722_s0 = inlined_call_operand.vmem [shape: f32[200,32], index: 0, kind: input, shape index: {}]   ;;  %s1723_s1 = inlined_call_operand.vmem [shape: f32[200,32], index: 1, kind: input, shape index: {}]   ;;  %s1724_s2 = inlined_call_operand.vmem [shape: f32[32,32], index: 2, kind: input, shape index: {}]   ;;  %s1725_s3 = inlined_call_operand.vmem [shape: f32[32,32], index: 3, kind: input, shape index: {}]   ;;  %s1726_s4 = inlined_call_operand.vmem [shape: f32[1,32], index: 4, kind: input, shape index: {}]   ;;  %s1727_s5 = inlined_call_operand.vmem [shape: f32[200,32], index: 5, kind: output, shape index: {}]  }
   0x1   :  { %s1418_s20 = smov 0  }
   0x2 LB: > { %s1427_s21 = sadd.s32 4294967295, %s1347_s20   ;;  %s1429_s22 = sadd.s32 1, %s1347_s20   ;;  %s1347_s20 = sphi %s1418_s20, %s1734_s20   ;;  %s1343_s19 = sphi %s1416_s19, %s1733_s19   ;;  %s1339_s18 = sphi %s1414_s18, %s1732_s18  }
   0x3   : > { %s134_s23 = ssub.s32 %s1347_s20, %s1429_s22  ;;  %s137_s24 = sadd.s32 1, %s1343_s19 }
   0x4   : > { %p135_p0 = scmp.eq.s32.totalorder %s134_s23, 0  ;;  %p147_p1 = scmp.ne.s32.totalorder %s1343_s19, %s1339_s18 }
   0x5   : > { %p148_p2 = scmp.eq.s32.totalorder %s1427_s21, 1  ;;  %p1013_p3 = scmp.ge.s32.totalorder %s1347_s20, 1 }
   0x6   : > { %s1437_s25 = scalar_select %p135_p0, %s1343_s19, %s137_s24  }
   0x7   : > { %p1439_p4 = por %p148_p2, %p147_p1  ;;  %p215_p5 = scmp.lt.s32.totalorder %s1347_s20, 3 }
   0x9   : > { %p216_p6 = pnand %p1013_p3, %p215_p5 }
   0xa   : > { %v318_v0 = vld [vmem:[%s1725_s3] sm:$0xff] (!%p216_p6)  ;;  %v319_v1 = vld [vmem:[%s1725_s3 + $0x8] sm:$0xff] (!%p216_p6)  ;;  %v1381_v3 = vmov (!%p216_p6), 0.0|0.0   ;;  %v320_v6 = vld [vmem:[%s1725_s3 + $0x10] sm:$0xff] (!%p216_p6)  ;;  %s1462_s14 = smul.u32 (!%p216_p6), 13, %s1427_s21  ;;  %vm1382_vm0 = vmmov (!%p216_p6), 0  }
   0xb   : > { %219 = sbr.rel (%p216_p6) target bundleno = 353 (0x161), region = 40  ;;  %v301_v2 = vld [vmem:[%s1724_s2] sm:$0xff] (!%p216_p6)  ;;  %1184 = vmatprep.subr.bf16.mxu0 (!%p216_p6), %v1381_v3  ;;  %1190 = vmatprep.subr.bf16.mxu1 (!%p216_p6), %v1381_v3  ;;  %v1185_v4 = vpack.c.bf16 (!%p216_p6), %v319_v1, %v318_v0  ;;  %v302_v5 = vld [vmem:[%s1724_s2 + $0x8] sm:$0xff] (!%p216_p6)  ;;  %v321_v7 = vld [vmem:[%s1725_s3 + $0x18] sm:$0xff] (!%p216_p6)  ;;  %v1383_v11 = vmov (!%p216_p6), 0.0   ;;  %vm322_vm1 = vcmask (!%p216_p6), 261120  }
   0xc   : > { %v1191_v8 = vpack.c.bf16 (!%p216_p6), %v302_v5, %v301_v2  ;;  %v303_v9 = vld [vmem:[%s1724_s2 + $0x10] sm:$0xff] (!%p216_p6)  ;;  %v304_v10 = vld [vmem:[%s1724_s2 + $0x18] sm:$0xff] (!%p216_p6)  ;;  %1098 = vmatprep.mubr.msk.f32.mxu0 (!%p216_p6), %vm1382_vm0, %v1383_v11  ;;  %1145 = vmatprep.mubr.msk.f32.mxu1 (!%p216_p6), %vm1382_vm0, %v1383_v11  ;;  %v1188_v12 = vpack.c.bf16 (!%p216_p6), %v321_v7, %v320_v6  ;;  %p260_p7 = scmp.lt.s32.totalorder (!%p216_p6), %s1462_s14, 24  ;;  %s252_s8 = sand.u32 (!%p216_p6), 1, %s1339_s18   ;;  %v1590_v42 = vld [vmem:[%s1726_s4] ss:$0 sm:$0xff] (!%p216_p6) }
   0xd   : > { %1186 = vmatpush3.bf16.msra.mxu0 (!%p216_p6), %v1185_v4  ;;  %v1194_v13 = vpack.c.bf16 (!%p216_p6), %v304_v10, %v303_v9  ;;  %s1196_s11 = smul.u32 (!%p216_p6), 104, %s252_s8 }
   0xe   : > { %1192 = vmatpush3.bf16.msra.mxu1 (!%p216_p6), %v1191_v8  ;;  %1187 = vmatprep.subr.bf16.mxu0 (!%p216_p6), %v1381_v3 }
   0xf   : > { %1193 = vmatprep.subr.bf16.mxu1 (!%p216_p6), %v1381_v3  ;;  %s1594_s18 = scalar_lea.vmem (!%p216_p6), [#allocation2], %s1196_s11  }
  0x11   : > { %1189 = vmatpush3.bf16.msra.mxu0 (!%p216_p6), %v1188_v12 }
  0x12   : > { %s261_s23 = scalar_select %p260_p7, %s1462_s14, 24  ;;  %1195 = vmatpush3.bf16.msra.mxu1 %v1194_v13 }
  0x13   : > { %s741_s12 = ssub.s32 (%p1439_p4), 25, %s1462_s14  ;;  %s1055_s13 = smul.u32 (%p1439_p4), 104, %s1427_s21 }
  0x14   : > { %s1014_s24 = sshll.u32 %s261_s23, 3  ;;  %p742_p8 = scmp.lt.s32.totalorder (%p1439_p4), %s741_s12, 13 }
  0x15   : > { %s1479_s29 = scalar_lea.vmem %s1723_s1, %s1014_s24  ;;  %s1484_s7 = scalar_lea.vmem %s1722_s0, %s1014_s24 }
  0x16   : > { %v305_v14 = vld [vmem:[%s1479_s29] sm:$0xff]  ;;  %v306_v16 = vld [vmem:[%s1479_s29 + $0x8] sm:$0xff]  ;;  %v307_v18 = vld [vmem:[%s1479_s29 + $0x10] sm:$0xff]  ;;  %s1640_s17 = scalar_lea.vmem (%p1439_p4), %s1727_s5, %s1055_s13  }
  0x17   : > { %v288_v15 = vld [vmem:[%s1484_s7] sm:$0xff]  ;;  %1099 = vmatmul.mubr.msk.f32.vlgmr.msra.gmra.mrb[0].mxu0 %vm322_vm1, %v305_v14  ;;  %v289_v17 = vld [vmem:[%s1484_s7 + $0x8] sm:$0xff]  ;;  %v290_v19 = vld [vmem:[%s1484_s7 + $0x10] sm:$0xff] }
  0x18   : > { %1146 = vmatmul.mubr.msk.f32.vlgmr.msra.gmra.mrb[0].mxu1 %vm322_vm1, %v288_v15  ;;  %1101 = vmatprep.mubr.msk.f32.mxu0 %vm1382_vm0, %v1383_v11  ;;  %v308_v20 = vld [vmem:[%s1479_s29 + $0x18] sm:$0xff]  ;;  %v309_v22 = vld [vmem:[%s1479_s29 + $0x20] sm:$0xff]  ;;  %v310_v24 = vld [vmem:[%s1479_s29 + $0x28] sm:$0xff] }
  0x19   : > { %1148 = vmatprep.mubr.msk.f32.mxu1 %vm1382_vm0, %v1383_v11  ;;  %v291_v21 = vld [vmem:[%s1484_s7 + $0x18] sm:$0xff]  ;;  %v292_v23 = vld [vmem:[%s1484_s7 + $0x20] sm:$0xff]  ;;  %v293_v25 = vld [vmem:[%s1484_s7 + $0x28] sm:$0xff] }
  0x1a   : > { %v311_v26 = vld [vmem:[%s1479_s29 + $0x30] sm:$0xff]  ;;  %v312_v28 = vld [vmem:[%s1479_s29 + $0x38] sm:$0xff]  ;;  %v313_v30 = vld [vmem:[%s1479_s29 + $0x40] sm:$0xff] }
  0x1b   : > { %1102 = vmatmul.mubr.msk.f32.gmra.mrb[2].mxu0 %vm322_vm1, %v306_v16  ;;  %v294_v27 = vld [vmem:[%s1484_s7 + $0x30] sm:$0xff]  ;;  %v295_v29 = vld [vmem:[%s1484_s7 + $0x38] sm:$0xff]  ;;  %v296_v31 = vld [vmem:[%s1484_s7 + $0x40] sm:$0xff] }
  0x1c   : > { %1149 = vmatmul.mubr.msk.f32.gmra.mrb[2].mxu1 %vm322_vm1, %v289_v17  ;;  %1104 = vmatprep.mubr.msk.f32.mxu0 %vm1382_vm0, %v1383_v11  ;;  %v314_v32 = vld [vmem:[%s1479_s29 + $0x48] sm:$0xff]  ;;  %v315_v34 = vld [vmem:[%s1479_s29 + $0x50] sm:$0xff]  ;;  %v316_v36 = vld [vmem:[%s1479_s29 + $0x58] sm:$0xff] }
  0x1d   : > { %1151 = vmatprep.mubr.msk.f32.mxu1 %vm1382_vm0, %v1383_v11  ;;  %v297_v33 = vld [vmem:[%s1484_s7 + $0x48] sm:$0xff]  ;;  %v298_v35 = vld [vmem:[%s1484_s7 + $0x50] sm:$0xff]  ;;  %v299_v37 = vld [vmem:[%s1484_s7 + $0x58] sm:$0xff] }
  0x1e   : > { %v317_v38 = vld [vmem:[%s1479_s29 + $0x60] sm:$0xff] }
  0x1f   : > { %1105 = vmatmul.mubr.msk.f32.gmra.mrb[4].mxu0 %vm322_vm1, %v307_v18  ;;  %v300_v39 = vld [vmem:[%s1484_s7 + $0x60] sm:$0xff] }
  0x20   : > { %1152 = vmatmul.mubr.msk.f32.gmra.mrb[4].mxu1 %vm322_vm1, %v290_v19  ;;  %1107 = vmatprep.mubr.msk.f32.mxu0 %vm1382_vm0, %v1383_v11 }
  0x21   : > { %1154 = vmatprep.mubr.msk.f32.mxu1 %vm1382_vm0, %v1383_v11 }
  0x23   : > { %1108 = vmatmul.mubr.msk.f32.gmra.mrb[6].mxu0 %vm322_vm1, %v308_v20 }
  0x24   : > { %1155 = vmatmul.mubr.msk.f32.gmra.mrb[6].mxu1 %vm322_vm1, %v291_v21  ;;  %1110 = vmatprep.mubr.msk.f32.mxu0 %vm1382_vm0, %v1383_v11 }
  0x25   : > { %1157 = vmatprep.mubr.msk.f32.mxu1 %vm1382_vm0, %v1383_v11 }
  0x27   : > { %1111 = vmatmul.mubr.msk.f32.gmra.mrb[8].mxu0 %vm322_vm1, %v309_v22 }
  0x28   : > { %1158 = vmatmul.mubr.msk.f32.gmra.mrb[8].mxu1 %vm322_vm1, %v292_v23  ;;  %1113 = vmatprep.mubr.msk.f32.mxu0 %vm1382_vm0, %v1383_v11 }
  0x29   : > { %1160 = vmatprep.mubr.msk.f32.mxu1 %vm1382_vm0, %v1383_v11 }
  0x2b   : > { %1114 = vmatmul.mubr.msk.f32.gmra.mrb[10].mxu0 %vm322_vm1, %v310_v24 }
  0x2c   : > { %1161 = vmatmul.mubr.msk.f32.gmra.mrb[10].mxu1 %vm322_vm1, %v293_v25  ;;  %1116 = vmatprep.mubr.msk.f32.mxu0 %vm1382_vm0, %v1383_v11 }
  0x2d   : > { %1163 = vmatprep.mubr.msk.f32.mxu1 %vm1382_vm0, %v1383_v11 }
  0x2f   : > { %1117 = vmatmul.mubr.msk.f32.gmra.mrb[12].mxu0 %vm322_vm1, %v311_v26 }
  0x30   : > { %1164 = vmatmul.mubr.msk.f32.gmra.mrb[12].mxu1 %vm322_vm1, %v294_v27  ;;  %1119 = vmatprep.mubr.msk.f32.mxu0 %vm1382_vm0, %v1383_v11 }
  0x31   : > { %1166 = vmatprep.mubr.msk.f32.mxu1 %vm1382_vm0, %v1383_v11 }
  0x33   : > { %1120 = vmatmul.mubr.msk.f32.gmra.mrb[14].mxu0 %vm322_vm1, %v312_v28 }
  0x34   : > { %1167 = vmatmul.mubr.msk.f32.gmra.mrb[14].mxu1 %vm322_vm1, %v295_v29  ;;  %1122 = vmatprep.mubr.msk.f32.mxu0 %vm1382_vm0, %v1383_v11 }
  0x35   : > { %1169 = vmatprep.mubr.msk.f32.mxu1 %vm1382_vm0, %v1383_v11 }
  0x37   : > { %1123 = vmatmul.mubr.msk.f32.gmra.mrb[16].mxu0 %vm322_vm1, %v313_v30 }
  0x38   : > { %1170 = vmatmul.mubr.msk.f32.gmra.mrb[16].mxu1 %vm322_vm1, %v296_v31  ;;  %1125 = vmatprep.mubr.msk.f32.mxu0 %vm1382_vm0, %v1383_v11 }
  0x39   : > { %1172 = vmatprep.mubr.msk.f32.mxu1 %vm1382_vm0, %v1383_v11 }
  0x3b   : > { %1126 = vmatmul.mubr.msk.f32.gmra.mrb[18].mxu0 %vm322_vm1, %v314_v32 }
  0x3c   : > { %1173 = vmatmul.mubr.msk.f32.gmra.mrb[18].mxu1 %vm322_vm1, %v297_v33  ;;  %1128 = vmatprep.mubr.msk.f32.mxu0 %vm1382_vm0, %v1383_v11 }
  0x3d   : > { %1175 = vmatprep.mubr.msk.f32.mxu1 %vm1382_vm0, %v1383_v11 }
  0x3f   : > { %1129 = vmatmul.mubr.msk.f32.gmra.mrb[20].mxu0 %vm322_vm1, %v315_v34 }
  0x40   : > { %1176 = vmatmul.mubr.msk.f32.gmra.mrb[20].mxu1 %vm322_vm1, %v298_v35  ;;  %1131 = vmatprep.mubr.msk.f32.mxu0 %vm1382_vm0, %v1383_v11 }
  0x41   : > { %1178 = vmatprep.mubr.msk.f32.mxu1 %vm1382_vm0, %v1383_v11 }
  0x43   : > { %1132 = vmatmul.mubr.msk.f32.gmra.mrb[22].mxu0 %vm322_vm1, %v316_v36 }
  0x44   : > { %1179 = vmatmul.mubr.msk.f32.gmra.mrb[22].mxu1 %vm322_vm1, %v299_v37  ;;  %1134 = vmatprep.mubr.msk.f32.mxu0 %vm1382_vm0, %v1383_v11 }
  0x45   : > { %1181 = vmatprep.mubr.msk.f32.mxu1 %vm1382_vm0, %v1383_v11 }
  0x47   : > { %1135 = vmatmul.mubr.msk.f32.gmra.mrb[24].mxu0 %vm322_vm1, %v317_v38 }
  0x48   : > { %1182 = vmatmul.mubr.msk.f32.gmra.mrb[24].mxu1 %vm322_vm1, %v300_v39 }
  0xea   : > { %v428_v40 = vpop.f32.mrb[0].mxu0 }
  0xeb   : > { %v597_v41 = vpop.f32.mrb[0].mxu1  ;;  %v1100_v43 = vpop.f32.mrb[1].mxu0 }
  0xec   : > { %v598_v44 = vadd.f32 %v597_v41, %v428_v40  ;;  %v1147_v45 = vpop.f32.mrb[1].mxu1 }
  0xee   : > { %v668_v46 = vadd.f32 %v1590_v42, %v598_v44  ;;  %v433_v47 = vpop.f32.mrb[2].mxu0 }
  0xef   : > { %v602_v48 = vpop.f32.mrb[2].mxu1  ;;  %v1103_v49 = vpop.f32.mrb[3].mxu0 }
  0xf0   : > { %vm681_vm2 = vcmp.ge.f32.partialorder %v668_v46, 0.0  ;;  %v694_v50 = vmul.f32 0.2, %v668_v46  ;;  %v603_v51 = vadd.f32 %v602_v48, %v433_v47  ;;  %v1150_v52 = vpop.f32.mrb[3].mxu1 }
  0xf2   : > { %v707_v53 = vsel %vm681_vm2, %v668_v46, %v694_v50  ;;  %v669_v54 = vadd.f32 %v1590_v42, %v603_v51  ;;  %v438_v55 = vpop.f32.mrb[4].mxu0 }
  0xf3   : > { %720 = vst.msk [vmem:[%s1594_s18] sm:$0xff] %vm322_vm1, %v707_v53  ;;  %v607_v56 = vpop.f32.mrb[4].mxu1  ;;  %v1106_v57 = vpop.f32.mrb[5].mxu0 }
  0xf4   : > { %vm682_vm3 = vcmp.ge.f32.partialorder %v669_v54, 0.0  ;;  %v695_v58 = vmul.f32 0.2, %v669_v54  ;;  %v608_v59 = vadd.f32 %v607_v56, %v438_v55  ;;  %v1153_v60 = vpop.f32.mrb[5].mxu1 }
  0xf6   : > { %v708_v61 = vsel %vm682_vm3, %v669_v54, %v695_v58  ;;  %v670_v62 = vadd.f32 %v1590_v42, %v608_v59  ;;  %v443_v63 = vpop.f32.mrb[6].mxu0 }
  0xf7   : > { %721 = vst.msk [vmem:[%s1594_s18 + $0x8] sm:$0xff] %vm322_vm1, %v708_v61  ;;  %v612_v0 = vpop.f32.mrb[6].mxu1  ;;  %v1109_v1 = vpop.f32.mrb[7].mxu0 }
  0xf8   : > { %vm683_vm4 = vcmp.ge.f32.partialorder %v670_v62, 0.0  ;;  %v696_v2 = vmul.f32 0.2, %v670_v62  ;;  %v613_v3 = vadd.f32 %v612_v0, %v443_v63  ;;  %v1156_v4 = vpop.f32.mrb[7].mxu1 }
  0xfa   : > { %v709_v5 = vsel %vm683_vm4, %v670_v62, %v696_v2  ;;  %v671_v6 = vadd.f32 %v1590_v42, %v613_v3  ;;  %v448_v7 = vpop.f32.mrb[8].mxu0 }
  0xfb   : > { %722 = vst.msk [vmem:[%s1594_s18 + $0x10] sm:$0xff] %vm322_vm1, %v709_v5  ;;  %v617_v8 = vpop.f32.mrb[8].mxu1  ;;  %v1112_v9 = vpop.f32.mrb[9].mxu0 }
  0xfc   : > { %vm684_vm5 = vcmp.ge.f32.partialorder %v671_v6, 0.0  ;;  %v697_v10 = vmul.f32 0.2, %v671_v6  ;;  %v618_v11 = vadd.f32 %v617_v8, %v448_v7  ;;  %v1159_v12 = vpop.f32.mrb[9].mxu1 }
  0xfe   : > { %v710_v13 = vsel %vm684_vm5, %v671_v6, %v697_v10  ;;  %v672_v14 = vadd.f32 %v1590_v42, %v618_v11  ;;  %v453_v15 = vpop.f32.mrb[10].mxu0 }
  0xff   : > { %723 = vst.msk [vmem:[%s1594_s18 + $0x18] sm:$0xff] %vm322_vm1, %v710_v13  ;;  %v622_v16 = vpop.f32.mrb[10].mxu1  ;;  %v1115_v17 = vpop.f32.mrb[11].mxu0 }
 0x100   : > { %vm685_vm6 = vcmp.ge.f32.partialorder %v672_v14, 0.0  ;;  %v698_v18 = vmul.f32 0.2, %v672_v14  ;;  %v623_v19 = vadd.f32 %v622_v16, %v453_v15  ;;  %v1162_v20 = vpop.f32.mrb[11].mxu1 }
 0x102   : > { %v711_v21 = vsel %vm685_vm6, %v672_v14, %v698_v18  ;;  %v673_v22 = vadd.f32 %v1590_v42, %v623_v19  ;;  %v458_v23 = vpop.f32.mrb[12].mxu0 }
 0x103   : > { %724 = vst.msk [vmem:[%s1594_s18 + $0x20] sm:$0xff] %vm322_vm1, %v711_v21  ;;  %v627_v24 = vpop.f32.mrb[12].mxu1  ;;  %v1118_v25 = vpop.f32.mrb[13].mxu0 }
 0x104   : > { %vm686_vm7 = vcmp.ge.f32.partialorder %v673_v22, 0.0  ;;  %v699_v26 = vmul.f32 0.2, %v673_v22  ;;  %v628_v27 = vadd.f32 %v627_v24, %v458_v23  ;;  %v1165_v28 = vpop.f32.mrb[13].mxu1 }
 0x106   : > { %v712_v29 = vsel %vm686_vm7, %v673_v22, %v699_v26  ;;  %v674_v30 = vadd.f32 %v1590_v42, %v628_v27  ;;  %v463_v31 = vpop.f32.mrb[14].mxu0 }
 0x107   : > { %725 = vst.msk [vmem:[%s1594_s18 + $0x28] sm:$0xff] %vm322_vm1, %v712_v29  ;;  %v632_v32 = vpop.f32.mrb[14].mxu1  ;;  %v1121_v33 = vpop.f32.mrb[15].mxu0 }
 0x108   : > { %vm687_vm8 = vcmp.ge.f32.partialorder %v674_v30, 0.0  ;;  %v700_v34 = vmul.f32 0.2, %v674_v30  ;;  %v633_v35 = vadd.f32 %v632_v32, %v463_v31  ;;  %v1168_v36 = vpop.f32.mrb[15].mxu1 }
 0x10a   : > { %v713_v37 = vsel %vm687_vm8, %v674_v30, %v700_v34  ;;  %v675_v38 = vadd.f32 %v1590_v42, %v633_v35  ;;  %v468_v39 = vpop.f32.mrb[16].mxu0 }
 0x10b   : > { %726 = vst.msk [vmem:[%s1594_s18 + $0x30] sm:$0xff] %vm322_vm1, %v713_v37  ;;  %v637_v40 = vpop.f32.mrb[16].mxu1  ;;  %v1124_v41 = vpop.f32.mrb[17].mxu0 }
 0x10c   : > { %vm688_vm9 = vcmp.ge.f32.partialorder %v675_v38, 0.0  ;;  %v701_v43 = vmul.f32 0.2, %v675_v38  ;;  %v638_v44 = vadd.f32 %v637_v40, %v468_v39  ;;  %v1171_v45 = vpop.f32.mrb[17].mxu1 }
 0x10e   : > { %v714_v46 = vsel %vm688_vm9, %v675_v38, %v701_v43  ;;  %v676_v47 = vadd.f32 %v1590_v42, %v638_v44  ;;  %v473_v48 = vpop.f32.mrb[18].mxu0 }
 0x10f   : > { %727 = vst.msk [vmem:[%s1594_s18 + $0x38] sm:$0xff] %vm322_vm1, %v714_v46  ;;  %v642_v49 = vpop.f32.mrb[18].mxu1  ;;  %v1127_v50 = vpop.f32.mrb[19].mxu0 }
 0x110   : > { %vm689_vm10 = vcmp.ge.f32.partialorder %v676_v47, 0.0  ;;  %v702_v51 = vmul.f32 0.2, %v676_v47  ;;  %v643_v52 = vadd.f32 %v642_v49, %v473_v48  ;;  %v1174_v53 = vpop.f32.mrb[19].mxu1 }
 0x112   : > { %v715_v54 = vsel %vm689_vm10, %v676_v47, %v702_v51  ;;  %v677_v55 = vadd.f32 %v1590_v42, %v643_v52  ;;  %v478_v56 = vpop.f32.mrb[20].mxu0 }
 0x113   : > { %728 = vst.msk [vmem:[%s1594_s18 + $0x40] sm:$0xff] %vm322_vm1, %v715_v54  ;;  %v647_v57 = vpop.f32.mrb[20].mxu1  ;;  %v1130_v58 = vpop.f32.mrb[21].mxu0 }
 0x114   : > { %vm690_vm11 = vcmp.ge.f32.partialorder %v677_v55, 0.0  ;;  %v703_v59 = vmul.f32 0.2, %v677_v55  ;;  %v648_v60 = vadd.f32 %v647_v57, %v478_v56  ;;  %v1177_v61 = vpop.f32.mrb[21].mxu1 }
 0x116   : > { %v716_v62 = vsel %vm690_vm11, %v677_v55, %v703_v59  ;;  %v678_v63 = vadd.f32 %v1590_v42, %v648_v60  ;;  %v483_v0 = vpop.f32.mrb[22].mxu0 }
 0x117   : > { %729 = vst.msk [vmem:[%s1594_s18 + $0x48] sm:$0xff] %vm322_vm1, %v716_v62  ;;  %v652_v1 = vpop.f32.mrb[22].mxu1  ;;  %v1133_v2 = vpop.f32.mrb[23].mxu0 }
 0x118   : > { %vm691_vm12 = vcmp.ge.f32.partialorder %v678_v63, 0.0  ;;  %v704_v3 = vmul.f32 0.2, %v678_v63  ;;  %v653_v4 = vadd.f32 %v652_v1, %v483_v0  ;;  %v1180_v5 = vpop.f32.mrb[23].mxu1 }
 0x11a   : > { %v717_v6 = vsel %vm691_vm12, %v678_v63, %v704_v3  ;;  %v679_v7 = vadd.f32 %v1590_v42, %v653_v4  ;;  %v488_v8 = vpop.f32.mrb[24].mxu0 }
 0x11b   : > { %730 = vst.msk [vmem:[%s1594_s18 + $0x50] sm:$0xff] %vm322_vm1, %v717_v6  ;;  %v657_v9 = vpop.f32.mrb[24].mxu1  ;;  %v1136_v10 = vpop.f32.mrb[25].mxu0 }
 0x11c   : > { %vm692_vm13 = vcmp.ge.f32.partialorder %v679_v7, 0.0  ;;  %v705_v11 = vmul.f32 0.2, %v679_v7  ;;  %v658_v12 = vadd.f32 %v657_v9, %v488_v8  ;;  %v1183_v13 = vpop.f32.mrb[25].mxu1 }
 0x11d   : > { %739 = sbr.rel (!%p1439_p4) target bundleno = 353 (0x161), region = 44 }
 0x11e   : > { %v718_v14 = vsel %vm692_vm13, %v679_v7, %v705_v11  ;;  %v680_v15 = vadd.f32 %v1590_v42, %v658_v12 }
 0x11f   : > { %731 = vst.msk [vmem:[%s1594_s18 + $0x58] sm:$0xff] %vm322_vm1, %v718_v14 }
 0x120   : > { %vm693_vm14 = vcmp.ge.f32.partialorder %v680_v15, 0.0  ;;  %v706_v16 = vmul.f32 0.2, %v680_v15 }
 0x122   : > { %v719_v17 = vsel %vm693_vm14, %v680_v15, %v706_v16 }
 0x123   : > { %732 = vst.msk [vmem:[%s1594_s18 + $0x60] sm:$0xff] %vm322_vm1, %v719_v17 }
 0x124   : > { %s1736_s12 = smov (!%p742_p8, %s741_s12), 13 }
 0x125   : > { %s1043_s20 = sshll.u32 %s1736_s12, 7 }
 0x126   : > { %p1046_p9 = scmp.eq.s32.totalorder %s1043_s20, 0 }
 0x127   : > { %1289 = sdivrem.u32 (!%p1046_p9), %s1736_s12, 13 }
 0x128   : > { %750 = sbr.rel (%p1046_p9) target bundleno = 353 (0x161), region = 48 }
 0x130   : > { %s1646_s26 = spop.drf %1289 }
 0x131   : > { %p1047_p10 = scmp.le.s32.totalorder %s1646_s26, 0 }
 0x132   : > { %s1729_s21 = smov (!%p1047_p10), %s1640_s17  ;;  %s1730_s14 = smov (!%p1047_p10), %s1594_s18 }
 0x133   : > { %960 = sbr.rel (%p1047_p10) target bundleno = 324 (0x144), region = 127  ;;  %s1655_s23 = smov (!%p1047_p10), 0  }
 0x134   : > { %s1657_s24 = smov (!%p1047_p10), 0  }
 0x13a LB: >> { %v838_v42 = vld [vmem:[%s1355_s14] sm:$0xff]  ;;  %v840_v18 = vld [vmem:[%s1355_s14 + $0x8] sm:$0xff]  ;;  %v842_v19 = vld [vmem:[%s1355_s14 + $0x10] sm:$0xff]  ;;  %s864_s27 = sadd.s32 1, %s1359_s23  ;;  %s832_s24 = sadd.s32 1, %s1363_s24   ;;  %s1363_s24 = sphi %s1657_s24, %s832_s24   ;;  %s1359_s23 = sphi %s1655_s23, %s1731_s23   ;;  %s1355_s14 = sphi %s1730_s14, %s869_s14   ;;  %s1351_s21 = sphi %s1729_s21, %s870_s21  }
 0x13b   : >> { %839 = vst [vmem:[%s1351_s21] sm:$0xff] %v838_v42  ;;  %841 = vst [vmem:[%s1351_s21 + $0x8] sm:$0xff] %v840_v18  ;;  %v844_v20 = vld [vmem:[%s1355_s14 + $0x18] sm:$0xff]  ;;  %v846_v21 = vld [vmem:[%s1355_s14 + $0x20] sm:$0xff]  ;;  %p865_p11 = scmp.ge.s32.totalorder %s864_s27, %s1646_s26  ;;  %p831_p12 = scmp.ge.s32.totalorder %s832_s24, %s1646_s26 }
 0x13c   : >> { %843 = vst [vmem:[%s1351_s21 + $0x10] sm:$0xff] %v842_v19  ;;  %v848_v22 = vld [vmem:[%s1355_s14 + $0x28] sm:$0xff]  ;;  %845 = vst [vmem:[%s1351_s21 + $0x18] sm:$0xff] %v844_v20  ;;  %v850_v23 = vld [vmem:[%s1355_s14 + $0x30] sm:$0xff] }
 0x13d   : >> { %847 = vst [vmem:[%s1351_s21 + $0x20] sm:$0xff] %v846_v21  ;;  %849 = vst [vmem:[%s1351_s21 + $0x28] sm:$0xff] %v848_v22  ;;  %v852_v24 = vld [vmem:[%s1355_s14 + $0x38] sm:$0xff]  ;;  %v854_v25 = vld [vmem:[%s1355_s14 + $0x40] sm:$0xff]  ;;  %s1738_s27 = smov (%p865_p11, %s864_s27), 0  ;;  %834 = sbr.rel (!%p831_p12) target bundleno = 314 (0x13a), region = 133 }
 0x13e   : >> { %851 = vst [vmem:[%s1351_s21 + $0x30] sm:$0xff] %v850_v23  ;;  %853 = vst [vmem:[%s1351_s21 + $0x38] sm:$0xff] %v852_v24  ;;  %v856_v26 = vld [vmem:[%s1355_s14 + $0x48] sm:$0xff]  ;;  %v858_v27 = vld [vmem:[%s1355_s14 + $0x50] sm:$0xff]  ;;  %s867_s28 = smul.u32 104, %s1738_s27  ;;  %s1731_s23 = smov %s1738_s27 }
 0x13f   : >> { %855 = vst [vmem:[%s1351_s21 + $0x40] sm:$0xff] %v854_v25  ;;  %v860_v28 = vld [vmem:[%s1355_s14 + $0x58] sm:$0xff]  ;;  %857 = vst [vmem:[%s1351_s21 + $0x48] sm:$0xff] %v856_v26  ;;  %v862_v29 = vld [vmem:[%s1355_s14 + $0x60] sm:$0xff] }
 0x140   : >> { %859 = vst [vmem:[%s1351_s21 + $0x50] sm:$0xff] %v858_v27  ;;  %861 = vst [vmem:[%s1351_s21 + $0x58] sm:$0xff] %v860_v28  ;;  %s869_s14 = scalar_lea.vmem %s1594_s18, %s867_s28 [#allocation2]  }
 0x141   : >> { %863 = vst [vmem:[%s1351_s21 + $0x60] sm:$0xff] %v862_v29  ;;  %s870_s21 = scalar_lea.vmem %s1640_s17, %s867_s28  }
 0x144 PF: > { %1291 = sdivrem.u32 %s1736_s12, 13 }
 0x145   : > { %s1048_s29 = smul.u32 104, %s1646_s26 }
 0x147   : > { %s875_s30 = scalar_lea.vmem %s1594_s18, %s1048_s29 [#allocation2]   ;;  %s877_s6 = scalar_lea.vmem %s1640_s17, %s1048_s29  }
 0x14d   : > { %s1292_s7 = spop.drf %1291 }
 0x14e   : > { %p1050_p13 = scmp.le.s32.totalorder %s1292_s7, 0 }
 0x14f   : > { %s1365_s8 = smov (!%p1050_p13), %s877_s6   ;;  %s1369_s9 = smov (!%p1050_p13), %s875_s30  }
 0x150   : > { %974 = sbr.rel (%p1050_p13) target bundleno = 353 (0x161), region = 138  ;;  %s1373_s10 = smov (!%p1050_p13), 0  }
 0x151   : > { %s1377_s11 = smov (!%p1050_p13), 0  }
 0x157 LB: >> { %v887_v30 = vld [vmem:[%s1371_s9] sm:$0xff]  ;;  %s889_s13 = sadd.s32 1, %s1375_s10  ;;  %s881_s11 = sadd.s32 1, %s1379_s11   ;;  %s1379_s11 = sphi %s1377_s11, %s881_s11   ;;  %s1375_s10 = sphi %s1373_s10, %s1374_s10   ;;  %s1371_s9 = sphi %s1369_s9, %s894_s9   ;;  %s1367_s8 = sphi %s1365_s8, %s895_s8  }
 0x158   : >> { %888 = vst [vmem:[%s1367_s8] sm:$0xff] %v887_v30  ;;  %p890_p0 = scmp.ge.s32.totalorder %s889_s13, %s1292_s7  ;;  %p880_p1 = scmp.ge.s32.totalorder %s881_s11, %s1292_s7 }
 0x15a   : >> { %s1740_s13 = smov (%p890_p0, %s889_s13), 0  ;;  %883 = sbr.rel (!%p880_p1) target bundleno = 343 (0x157), region = 144 }
 0x15b   : >> { %s1051_s18 = sshll.u32 %s1740_s13, 3  ;;  %s1374_s10 = smov %s1740_s13  }
 0x15c   : >> { %s894_s9 = scalar_lea.vmem %s875_s30, %s1051_s18 [#allocation2]   ;;  %s895_s8 = scalar_lea.vmem %s877_s6, %s1051_s18  }
 0x161 PF: > { %p12_p2 = scmp.ge.s32.totalorder %s1429_s22, 4   ;;  %s1732_s18 = smov %s1343_s19 }
 0x162   : > { %s1733_s19 = smov %s1437_s25  ;;  %s1734_s20 = smov %s1429_s22 }
 0x163   :  { %14 = sbr.rel (!%p12_p2) target bundleno = 2 (0x2), region = 155 }

</bundles_post_ra>
